<compile_context>
chip_gen: v7x
topology: tpu7x:2x2x1
jax: 0.10.0
libtpu: 0.0.40
codegen_flags: <defaults>
</compile_context>

<pallas_src>
import math
import numpy as np
import jax
import jax.numpy as jnp
from jax.experimental import pallas as pl
from jax.experimental.pallas import tpu as pltpu


def _make_kernel(scale, output_attention):
    def kernel(q_ref, k_ref, v_ref, *out_refs):
        o_ref = out_refs[0]
        # Fold the softmax scale into the (small) Q tile.
        q = q_ref[...] * scale            # (G, TQ, E) compute dtype
        k = k_ref[...]                    # (G, E,  S) compute dtype (pre-transposed)
        v = v_ref[...]                    # (G, S,  D) compute dtype

        # scores = q @ k, batched over the G-head group; f32 accumulation on the MXU.
        scores = jax.lax.dot_general(
            q, k, (((2,), (1,)), ((0,), (0,))),
            preferred_element_type=jnp.float32)            # (G, TQ, S) f32

        # Row-wise softmax with normalization deferred past the PV matmul.
        # (The torch forward never applies attn_mask -> no fully-masked-row hazard.)
        m = jnp.max(scores, axis=-1, keepdims=True)
        e = jnp.exp(scores - m)                            # (G, TQ, S) f32
        denom = jnp.sum(e, axis=-1, keepdims=True)         # (G, TQ, 1) f32
        inv = pl.reciprocal(denom, approx=True)            # EUP slot, frees VALU

        o_un = jax.lax.dot_general(
            e.astype(v.dtype), v, (((2,), (1,)), ((0,), (0,))),
            preferred_element_type=jnp.float32)            # (G, TQ, D) f32
        o_ref[...] = (o_un * inv).astype(o_ref.dtype)

        if output_attention:
            # Only this path pays for normalizing the full TQ x S matrix and for
            # its HBM writeback.
            out_refs[1][...] = (e * inv).astype(out_refs[1].dtype)

    return kernel


def full_attention_ds(queries, keys, values, attn_mask=None, tau=None, delta=None, *,
                      scale=None, output_attention=False, q_tile=None,
                      heads_per_block=None, compute_dtype=jnp.bfloat16,
                      attn_dtype=None):
    """Pallas TPU forward of FullAttention_DS.

    queries : (B, N, L, H, E)
    keys    : (B, N, S, H, E)
    values  : (B, N, S, H, D)
    Returns (out, A) with out (B, N, L, H, D) and A (B, N, H, L, S) or None.
    """
    B, N, L, H, E = queries.shape
    S = keys.shape[2]
    D = values.shape[-1]
    if scale is None:
        scale = 1.0 / math.sqrt(E)
    orig_dtype = queries.dtype
    if attn_dtype is None:
        attn_dtype = orig_dtype   # pass jnp.bfloat16 on hot paths to halve A writeback

    # TODO(synk): attn_mask / tau / delta are accepted but unused — the torch
    # FullAttention_DS.forward never applies them; attention_dropout is identity at eval.
    del attn_mask, tau, delta

    # Cast BEFORE the layout plumbing so the relayout transposes move half the bytes.
    if compute_dtype is not None and queries.dtype != compute_dtype:
        queries = queries.astype(compute_dtype)
        keys = keys.astype(compute_dtype)
        values = values.astype(compute_dtype)

    # Layout plumbing (wrapper-side XLA): fold (B, N, H) into one axis so each grid
    # step sees lane-dense 2-D slabs per head; K is additionally pre-transposed to
    # (E, S) so the kernel's QK^T dot needs no per-step transpose of K.
    BNH = B * N * H
    q = jnp.transpose(queries, (0, 1, 3, 2, 4)).reshape(BNH, L, E)
    k = jnp.transpose(keys,    (0, 1, 3, 4, 2)).reshape(BNH, E, S)
    v = jnp.transpose(values,  (0, 1, 3, 2, 4)).reshape(BNH, S, D)

    itemsize = q.dtype.itemsize

    # Heads per grid step (batched 3-D blocks): amortizes per-step overhead and
    # enlarges per-step DMA / MXU work; bounded so the K/V slab stays modest.
    if heads_per_block is None:
        heads_per_block = 1
        for cand in (16, 8, 4, 2):
            if H % cand == 0 and 2 * cand * S * (E + D) * itemsize <= 8 * 1024 * 1024:
                heads_per_block = cand
                break
    G = heads_per_block
    if H % G != 0:
        raise ValueError("heads_per_block must divide H")

    # VMEM budget: cap against physical VMEM (v7x only has 64 MiB per TensorCore).
    try:
        phys_vmem = pltpu.get_tpu_info().vmem_capacity_bytes
    except Exception:
        phys_vmem = 128 * 1024 * 1024
    vmem_cap = min(100 * 1024 * 1024, (phys_vmem * 3) // 4)

    # Query tile: largest of 512/256/128 that divides L and keeps the f32 TQ x S
    # intermediates within budget; small L uses the whole L.  (Padding L would be
    # better than the q_tile=L fallback for large awkward L.)
    if q_tile is None:
        for cand in (512, 256, 128):
            if L % cand == 0 and 3 * G * cand * S * 4 <= vmem_cap // 4:
                q_tile = cand
                break
        if q_tile is None:
            if L <= 512:
                q_tile = L
            else:
                divs = [d for d in range(8, 513, 8) if L % d == 0]
                q_tile = max(divs) if divs else L
    if L % q_tile != 0:
        raise ValueError("q_tile must divide L")
    n_q = L // q_tile

    # Per-step VMEM estimate; fall back to single-buffered K/V when too large.
    kv_bytes = G * S * (E + D) * itemsize
    kv_buffers = 2
    if kv_buffers * kv_bytes > vmem_cap // 2:
        kv_buffers = 1
    io_bytes = 2 * G * q_tile * (E * itemsize
                                 + D * np.dtype(orig_dtype).itemsize
                                 + (S * np.dtype(attn_dtype).itemsize
                                    if output_attention else 0))
    interm_bytes = G * q_tile * (3 * S + 2 * D) * 4
    est = kv_buffers * kv_bytes + io_bytes + interm_bytes
    vmem_limit = int(min(max(2 * est, 32 * 1024 * 1024), vmem_cap))

    kv_kwargs = {} if kv_buffers == 2 else {"pipeline_mode": pl.Buffered(1)}

    kernel = _make_kernel(scale, output_attention)

    in_specs = [
        pl.BlockSpec((G, q_tile, E), lambda g, qi: (g, qi, 0)),
        pl.BlockSpec((G, E, S), lambda g, qi: (g, 0, 0), **kv_kwargs),
        pl.BlockSpec((G, S, D), lambda g, qi: (g, 0, 0), **kv_kwargs),
    ]
    out_specs = [pl.BlockSpec((G, q_tile, D), lambda g, qi: (g, qi, 0))]
    out_shape = [jax.ShapeDtypeStruct((BNH, L, D), orig_dtype)]
    if output_attention:
        out_specs.append(pl.BlockSpec((G, q_tile, S), lambda g, qi: (g, qi, 0)))
        out_shape.append(jax.ShapeDtypeStruct((BNH, L, S), attn_dtype))

    results = pl.pallas_call(
        kernel,
        grid=(BNH // G, n_q),
        in_specs=in_specs,
        out_specs=out_specs,
        out_shape=out_shape,
        compiler_params=pltpu.CompilerParams(
            # Every grid step writes a disjoint output tile -> both axes parallel.
            dimension_semantics=("parallel", "parallel"),
            vmem_limit_bytes=vmem_limit,
        ),
    )(q, k, v)

    out = jnp.transpose(results[0].reshape(B, N, H, L, D), (0, 1, 3, 2, 4))  # (B,N,L,H,D)
    if output_attention:
        A = results[1].reshape(B, N, H, L, S)                                # (B,N,H,L,S)
        return out, A
    return out, None


def _reference(queries, keys, values, scale=None):
    """Pure-JAX reference mirroring the torch forward (eval mode, no mask)."""
    E = queries.shape[-1]
    if scale is None:
        scale = 1.0 / math.sqrt(E)
    scores = jnp.einsum('bnlhe,bnshe->bnhls', queries, keys)
    A = jax.nn.softmax(scale * scores, axis=-1)
    out = jnp.einsum('bnhls,bnshd->bnlhd', A, values)
    return out, A


if __name__ == "__main__":
    # Small deterministic example: B=2, N=2, L=S=8, H=4, E=D=32
    B, N, L, S, H, E, D = 2, 2, 8, 8, 4, 32, 32

    key = jax.random.PRNGKey(0)
    kq, kk, kv = jax.random.split(key, 3)
    queries = jax.random.normal(kq, (B, N, L, H, E), jnp.float32)
    keys_in = jax.random.normal(kk, (B, N, S, H, E), jnp.float32)
    values = jax.random.normal(kv, (B, N, S, H, D), jnp.float32)
    # Shape kept only for API parity; the module's forward never uses it.
    attn_mask = jnp.zeros((B, 1, L, S), jnp.float32)

    ref_out, ref_attn = _reference(queries, keys_in, values)

    # Path 1: exact f32 compute, output_attention=True (validates out and A).
    out, attn = full_attention_ds(queries, keys_in, values, attn_mask,
                                  output_attention=True, compute_dtype=None)
    out = jax.block_until_ready(out)
    attn = jax.block_until_ready(attn)
    assert out.shape == (B, N, L, H, D)
    assert attn.shape == (B, N, H, L, S)
    np.testing.assert_allclose(np.asarray(out), np.asarray(ref_out),
                               rtol=2e-3, atol=2e-3)
    np.testing.assert_allclose(np.asarray(attn), np.asarray(ref_attn),
                               rtol=2e-3, atol=2e-3)

    # Path 2 (module default): bf16 MXU operands, A never materialized.
    out2, none_attn = full_attention_ds(queries, keys_in, values, attn_mask,
                                        output_attention=False)
    out2 = jax.block_until_ready(out2)
    assert none_attn is None
    assert out2.dtype == queries.dtype
    np.testing.assert_allclose(np.asarray(out2), np.asarray(ref_out),
                               rtol=5e-2, atol=5e-2)

    print("KERNEL_OK")
</pallas_src>

<mosaic_0001>
module attributes {stable_mosaic.version = 11 : i64} {
  func.func @kernel(%arg0: i32, %arg1: i32, %arg2: memref<4x8x32xf32, #tpu.memory_space<vmem>>, %arg3: memref<4x32x8xf32, #tpu.memory_space<vmem>>, %arg4: memref<4x8x32xf32, #tpu.memory_space<vmem>>, %arg5: memref<4x8x32xf32, #tpu.memory_space<vmem>>, %arg6: memref<4x8x8xf32, #tpu.memory_space<vmem>>) attributes {dimension_semantics = [#tpu.dimension_semantics<parallel>, #tpu.dimension_semantics<parallel>], iteration_bounds = array<i64: 4, 1>, scalar_prefetch = 0 : i64, scratch_operands = 0 : i64, tpu.core_type = #tpu.core_type<tc>, window_params = [{transform_indices = @transform_0, window_bounds = array<i64: 4, 8, 32>}, {transform_indices = @transform_1, window_bounds = array<i64: 4, 32, 8>}, {transform_indices = @transform_2, window_bounds = array<i64: 4, 8, 32>}, {transform_indices = @transform_3, window_bounds = array<i64: 4, 8, 32>}, {transform_indices = @transform_4, window_bounds = array<i64: 4, 8, 8>}]} {
    %c0 = arith.constant 0 : index
    %c0_0 = arith.constant 0 : index
    %c0_1 = arith.constant 0 : index
    %0 = vector.load %arg2[%c0, %c0_0, %c0_1] : memref<4x8x32xf32, #tpu.memory_space<vmem>>, vector<4x8x32xf32>
    %cst = arith.constant 0.176776692 : f32
    %1 = vector.broadcast %cst : f32 to vector<4x8x32xf32>
    %2 = arith.mulf %0, %1 : vector<4x8x32xf32>
    %c0_2 = arith.constant 0 : index
    %c0_3 = arith.constant 0 : index
    %c0_4 = arith.constant 0 : index
    %3 = vector.load %arg3[%c0_2, %c0_3, %c0_4] : memref<4x32x8xf32, #tpu.memory_space<vmem>>, vector<4x32x8xf32>
    %c0_5 = arith.constant 0 : index
    %c0_6 = arith.constant 0 : index
    %c0_7 = arith.constant 0 : index
    %4 = vector.load %arg4[%c0_5, %c0_6, %c0_7] : memref<4x8x32xf32, #tpu.memory_space<vmem>>, vector<4x8x32xf32>
    %cst_8 = arith.constant dense<0.000000e+00> : vector<4x8x8xf32>
    %5 = tpu.matmul %2, %3, %cst_8 {dimension_numbers = #tpu.dot_dimension_numbers<[2], [1], [1], [2], [0, 0, 0, 1, 1, 2], [0], [0]>} : vector<4x8x32xf32>, vector<4x32x8xf32>, vector<4x8x8xf32> -> vector<4x8x8xf32>
    %cst_9 = arith.constant dense<0xFF800000> : vector<4x8xf32>
    %6 = vector.multi_reduction <maximumf>, %5, %cst_9 [2] : vector<4x8x8xf32> to vector<4x8xf32>
    %7 = vector.shape_cast %6 : vector<4x8xf32> to vector<4x8x1xf32>
    %8 = vector.broadcast %7 : vector<4x8x1xf32> to vector<4x8x8xf32>
    %9 = arith.subf %5, %8 : vector<4x8x8xf32>
    %10 = math.exp %9 : vector<4x8x8xf32>
    %cst_10 = arith.constant dense<0.000000e+00> : vector<4x8xf32>
    %11 = vector.multi_reduction <add>, %10, %cst_10 [2] : vector<4x8x8xf32> to vector<4x8xf32>
    %12 = vector.shape_cast %11 : vector<4x8xf32> to vector<4x8x1xf32>
    %13 = tpu.reciprocal %12 {approx = true} : vector<4x8x1xf32> -> vector<4x8x1xf32>
    %cst_11 = arith.constant dense<0.000000e+00> : vector<4x8x32xf32>
    %14 = tpu.matmul %10, %4, %cst_11 {dimension_numbers = #tpu.dot_dimension_numbers<[2], [1], [1], [2], [0, 0, 0, 1, 1, 2], [0], [0]>} : vector<4x8x8xf32>, vector<4x8x32xf32>, vector<4x8x32xf32> -> vector<4x8x32xf32>
    %15 = vector.broadcast %13 : vector<4x8x1xf32> to vector<4x8x32xf32>
    %16 = arith.mulf %14, %15 : vector<4x8x32xf32>
    %c0_12 = arith.constant 0 : index
    %c0_13 = arith.constant 0 : index
    %c0_14 = arith.constant 0 : index
    %17 = vector.load %arg5[%c0_12, %c0_13, %c0_14] : memref<4x8x32xf32, #tpu.memory_space<vmem>>, vector<4x8x32xf32>
    tpu.vector_store %arg5[%c0_12, %c0_13, %c0_14], %16 {strides = array<i32>} : memref<4x8x32xf32, #tpu.memory_space<vmem>>, vector<4x8x32xf32>,
    %18 = vector.broadcast %13 : vector<4x8x1xf32> to vector<4x8x8xf32>
    %19 = arith.mulf %10, %18 : vector<4x8x8xf32>
    %c0_15 = arith.constant 0 : index
    %c0_16 = arith.constant 0 : index
    %c0_17 = arith.constant 0 : index
    %20 = vector.load %arg6[%c0_15, %c0_16, %c0_17] : memref<4x8x8xf32, #tpu.memory_space<vmem>>, vector<4x8x8xf32>
    tpu.vector_store %arg6[%c0_15, %c0_16, %c0_17], %19 {strides = array<i32>} : memref<4x8x8xf32, #tpu.memory_space<vmem>>, vector<4x8x8xf32>,
    return
  }
  func.func @transform_0(%arg0: i32, %arg1: i32) -> (i32, i32, i32) {
    %c0_i32 = arith.constant 0 : i32
    %c0_i32_0 = arith.constant 0 : i32
    return %arg0, %arg1, %c0_i32 : i32, i32, i32
  }
  func.func @transform_1(%arg0: i32, %arg1: i32) -> (i32, i32, i32) {
    %c0_i32 = arith.constant 0 : i32
    %c0_i32_0 = arith.constant 0 : i32
    %c0_i32_1 = arith.constant 0 : i32
    return %arg0, %c0_i32, %c0_i32_0 : i32, i32, i32
  }
  func.func @transform_2(%arg0: i32, %arg1: i32) -> (i32, i32, i32) {
    %c0_i32 = arith.constant 0 : i32
    %c0_i32_0 = arith.constant 0 : i32
    %c0_i32_1 = arith.constant 0 : i32
    return %arg0, %c0_i32, %c0_i32_0 : i32, i32, i32
  }
  func.func @transform_3(%arg0: i32, %arg1: i32) -> (i32, i32, i32) {
    %c0_i32 = arith.constant 0 : i32
    %c0_i32_0 = arith.constant 0 : i32
    return %arg0, %arg1, %c0_i32 : i32, i32, i32
  }
  func.func @transform_4(%arg0: i32, %arg1: i32) -> (i32, i32, i32) {
    %c0_i32 = arith.constant 0 : i32
    %c0_i32_0 = arith.constant 0 : i32
    return %arg0, %arg1, %c0_i32 : i32, i32, i32
  }
}

</mosaic_0001>

<bundles_post_ra>
// kernel: tpu_custom_call.1
= control target key start
LH: loop header
LB: loop body
LE: loop exit
PB: predicated region body
PF: predicated region fallthrough
CT: control target
= control target key end

     0   :  { %10 = vsyncpa [#allocation3], 0  ;;  %s1650_s0 = inlined_call_operand.vmem [shape: f32[16,8,32], index: 0, kind: input, shape index: {}]   ;;  %s1651_s1 = inlined_call_operand.vmem [shape: f32[16,32,8], index: 1, kind: input, shape index: {}]   ;;  %s1652_s2 = inlined_call_operand.vmem [shape: f32[16,8,32], index: 2, kind: input, shape index: {}]   ;;  %s1653_s3 = inlined_call_operand.hbm [shape: f32[16,8,32], index: 3, kind: output, shape index: {0}]   ;;  %s1654_s4 = inlined_call_operand.vmem [shape: f32[16,8,8], index: 4, kind: output, shape index: {1}]  }
   0x1   :  { %12 = vsyncpa [#allocation3 + $0x1], 0  ;;  %s1454_s15 = smov 0   ;;  %s1456_s16 = smov 0  }
   0x2   :  { %s1458_s17 = smov 0   ;;  %s1460_s18 = smov 0  }
   0x3   :  { %s1462_s19 = smov 0   ;;  %s1464_s20 = smov 0  }
   0x4 LB: > { %s1121_s21 = sadd.s32 4294967295, %s1421_s20   ;;  %s1122_s22 = sadd.s32 4294967294, %s1421_s20   ;;  %s1421_s20 = sphi %s1464_s20, %s18_s20   ;;  %s1417_s19 = sphi %s1462_s19, %s1661_s19   ;;  %s1413_s18 = sphi %s1460_s18, %s1660_s18   ;;  %s1409_s17 = sphi %s1458_s17, %s1659_s17   ;;  %s1405_s16 = sphi %s1456_s16, %s1658_s16   ;;  %s1401_s15 = sphi %s1454_s15, %s1657_s15  }
   0x5   : > { %s30_s23 = sadd.s32 1, %s1417_s19  ;;  %s119_s24 = sadd.s32 1, %s1409_s17 }
   0x6   : > { %p32_p0 = scmp.ge.s32.totalorder %s30_s23, 4  ;;  %p129_p1 = scmp.ne.s32.totalorder %s1409_s17, %s1405_s16 }
   0x7   : > { %p130_p2 = scmp.eq.s32.totalorder %s1121_s21, 3  ;;  %p135_p3 = scmp.ne.s32.totalorder %s1405_s16, %s1401_s15 }
   0x8   : > { %s1663_s23 = smov (%p32_p0, %s30_s23), 0  ;;  %p136_p5 = scmp.eq.s32.totalorder %s1122_s22, 3 }
   0x9   : > { %p1494_p4 = por %p130_p2, %p129_p1  ;;  %s114_s26 = ssub.s32 %s1417_s19, %s1663_s23 }
   0xa   : > { %p1125_p6 = scmp.ge.s32.totalorder %s1421_s20, 1  ;;  %p117_p7 = scmp.eq.s32.totalorder %s114_s26, 0 }
   0xb   : > { %p1501_p8 = por %p136_p5, %p135_p3  ;;  %p213_p9 = scmp.lt.s32.totalorder %s1421_s20, 5 }
   0xc   : > { %s1507_s28 = scalar_select %p117_p7, %s1409_s17, %s119_s24  }
   0xd   : > { %p214_p10 = pnand %p1125_p6, %p213_p9 }
   0xe   : > { %s1127_s29 = sshll.u32 (!%p214_p10), %s1413_s18, 2  ;;  %v1423_v0 = vmov (!%p214_p10), 0.0|0.0   ;;  %vm1424_vm0 = vmmov (!%p214_p10), 0   ;;  %v1425_v1 = vmov (!%p214_p10), 0.0   ;;  %vm321_vm1 = vcmask (!%p214_p10), 261120   ;;  %s248_s26 = sand.u32 (!%p214_p10), 1, %s1405_s16  }
   0xf   : > { %217 = sbr.rel (%p214_p10) target bundleno = 646 (0x286), region = 32  ;;  %1243 = vmatprep.subr.bf16.mxu0 (!%p214_p10), %v1423_v0  ;;  %p262_p11 = scmp.lt.s32.totalorder (!%p214_p10), %s1127_s29, 15  ;;  %1249 = vmatprep.subr.bf16.mxu1 (!%p214_p10), %v1423_v0  ;;  %vm614_vm2 = vcmask (!%p214_p10), 64512  }
  0x10   : > { %1187 = vmatprep.mubr.msk.f32.mxu0 (!%p214_p10), %vm1424_vm0, %v1425_v1  ;;  %1198 = vmatprep.mubr.msk.f32.mxu1 (!%p214_p10), %vm1424_vm0, %v1425_v1  ;;  %s1150_s6 = sshll.u32 (!%p214_p10), %s1413_s18, 9  ;;  %s1604_s10 = scalar_lea.sflag (!%p214_p10), [#allocation3], %s248_s26 }
  0x11   : > { %s1601_s9 = scalar_lea.hbm (!%p214_p10), %s1653_s3, %s1150_s6 }
  0x16   : > { %s1665_s29 = smov (!%p262_p11, %s1127_s29), 15 }
  0x17   : > { %s1149_s30 = sshll.u32 %s1665_s29, 5  ;;  %s1514_s5 = sshll.u32 %s1665_s29, 3 }
  0x18   : > { %s1519_s8 = scalar_lea.vmem %s1651_s1, %s1149_s30  ;;  %s1528_s11 = scalar_lea.vmem %s1650_s0, %s1514_s5 }
  0x19   : > { %v301_v2 = vld [vmem:[%s1519_s8] sm:$0xff]  ;;  %v302_v3 = vld [vmem:[%s1519_s8 + $0x8] sm:$0xff]  ;;  %v303_v7 = vld [vmem:[%s1519_s8 + $0x10] sm:$0xff]  ;;  %s281_s14 = scalar_lea.vmem %s1652_s2, %s1514_s5  ;;  %s291_s24 = scalar_lea.vmem %s1654_s4, %s1514_s5 }
  0x1a   : > { %v305_v4 = vld [vmem:[%s1519_s8 + $0x20] sm:$0xff]  ;;  %v1244_v5 = vpack.c.bf16 %v302_v3, %v301_v2  ;;  %v306_v6 = vld [vmem:[%s1519_s8 + $0x28] sm:$0xff]  ;;  %v304_v8 = vld [vmem:[%s1519_s8 + $0x18] sm:$0xff]  ;;  %s1126_s29 = sshll.u32 %s248_s26, 5 }
  0x1b   : > { %v1250_v9 = vpack.c.bf16 %v306_v6, %v305_v4  ;;  %v307_v10 = vld [vmem:[%s1519_s8 + $0x30] sm:$0xff]  ;;  %v308_v11 = vld [vmem:[%s1519_s8 + $0x38] sm:$0xff]  ;;  %v1247_v12 = vpack.c.bf16 %v304_v8, %v303_v7  ;;  %v293_v13 = vld [vmem:[%s1528_s11] sm:$0xff]  ;;  %s250_s30 = scalar_lea.vmem [#allocation2], %s1126_s29 }
  0x1c   : > { %1245 = vmatpush3.bf16.msra.mxu0 %v1244_v5  ;;  %v1253_v14 = vpack.c.bf16 %v308_v11, %v307_v10  ;;  %v309_v15 = vld [vmem:[%s1519_s8 + $0x40] sm:$0xff]  ;;  %v310_v16 = vld [vmem:[%s1519_s8 + $0x48] sm:$0xff]  ;;  %v297_v20 = vmul.f32 0.17677669, %v293_v13  ;;  %v311_v24 = vld [vmem:[%s1519_s8 + $0x50] sm:$0xff]  ;;  %s986_s5 = sshll.u32 %s250_s30, 4  ;;  %s1596_s5 = int_to_ptr.vmem [resolvable:$true] %s986_s5 }
  0x1d   : > { %1246 = vmatprep.subr.bf16.mxu0 %v1423_v0  ;;  %1251 = vmatpush3.bf16.msra.mxu1 %v1250_v9  ;;  %v294_v17 = vld [vmem:[%s1528_s11 + $0x8] sm:$0xff]  ;;  %v313_v18 = vld [vmem:[%s1519_s8 + $0x60] sm:$0xff]  ;;  %v1256_v21 = vpack.c.bf16 %v310_v16, %v309_v15  ;;  %v312_v25 = vld [vmem:[%s1519_s8 + $0x58] sm:$0xff]  ;;  %s1343_s18 = scalar_lea.vmem %s1596_s5, 512 }
  0x1e   : > { %1252 = vmatprep.subr.bf16.mxu1 %v1423_v0  ;;  %v314_v19 = vld [vmem:[%s1519_s8 + $0x68] sm:$0xff]  ;;  %v298_v22 = vmul.f32 0.17677669, %v294_v17  ;;  %v315_v26 = vld [vmem:[%s1519_s8 + $0x70] sm:$0xff]  ;;  %v316_v27 = vld [vmem:[%s1519_s8 + $0x78] sm:$0xff]  ;;  %v1259_v28 = vpack.c.bf16 %v312_v25, %v311_v24  ;;  %p1344_p12 = scmp.ne.s32.totalorder %s1596_s5, %s1343_s18 }
  0x1f   : > { %v1262_v23 = vpack.c.bf16 %v314_v19, %v313_v18  ;;  %v295_v29 = vld [vmem:[%s1528_s11 + $0x10] sm:$0xff]  ;;  %v1265_v30 = vpack.c.bf16 %v316_v27, %v315_v26  ;;  %v296_v31 = vld [vmem:[%s1528_s11 + $0x18] sm:$0xff]  ;;  %v317_v46 = vld [vmem:[%s281_s14] sm:$0xff]  ;;  %s1426_s11 = smov [#allocation2]  }
  0x20   : > { %1248 = vmatpush3.bf16.msra.mxu0 %v1247_v12  ;;  %v299_v32 = vmul.f32 0.17677669, %v295_v29  ;;  %v300_v33 = vmul.f32 0.17677669, %v296_v31  ;;  %v318_v47 = vld [vmem:[%s281_s14 + $0x8] sm:$0xff]  ;;  %v319_v59 = vld [vmem:[%s281_s14 + $0x10] sm:$0xff]  ;;  %p1345_p13 = pnand %p1344_p12, %p1494_p4 }
  0x21   : > { %1254 = vmatpush3.bf16.msra.mxu1 %v1253_v14  ;;  %1255 = vmatprep.subr.bf16.mxu0 %v1423_v0  ;;  %v320_v63 = vld [vmem:[%s281_s14 + $0x18] sm:$0xff]  ;;  %s1347_s12 = sshll.u32 %s1426_s11, 4  ;;  %s1348_s12 = int_to_ptr.vmem [resolvable:$false] %s1347_s12 }
  0x22   : > { %1261 = vmatprep.subr.bf16.mxu1 %v1423_v0  ;;  %p1346_p0 = pneg %p1345_p13  ;;  %s1349_s13 = scalar_lea.vmem %s1348_s12, 1024 }
  0x23   : > { %1188 = vmatmul.mubr.msk.f32.vlgmr.msra.gmra.mrb[0].mxu0 %vm321_vm1, %v297_v20  ;;  %p1350_p1 = scmp.lt.s32.totalorder %s1596_s5, %s1348_s12  ;;  %p1351_p2 = scmp.lt.s32.totalorder %s1349_s13, %s1343_s18 }
  0x24   : > { %1257 = vmatpush3.bf16.msra.mxu0 %v1256_v21  ;;  %1199 = vmatmul.mubr.msk.f32.vlgmr.msra.gmra.mrb[0].mxu1 %vm321_vm1, %v298_v22 }
  0x25   : > { %1258 = vmatprep.subr.bf16.mxu0 %v1423_v0  ;;  %1263 = vmatpush3.bf16.msra.mxu1 %v1262_v23  ;;  %p1352_p3 = por %p1351_p2, %p1350_p1 }
  0x26   : > { %1209 = vmatprep.mubr.msk.f32.mxu0 %vm1424_vm0, %v1425_v1  ;;  %1264 = vmatprep.subr.bf16.mxu1 %v1423_v0 }
  0x27   : > { %1220 = vmatprep.mubr.msk.f32.mxu1 %vm1424_vm0, %v1425_v1  ;;  %p1353_p5 = pnand %p1352_p3, %p1346_p0 }
  0x28   : > { %1260 = vmatpush3.bf16.msra.mxu0 %v1259_v28 }
  0x29   : > { %1266 = vmatpush3.bf16.msra.mxu1 %v1265_v30  ;;  %1223 = vmatprep.subr.mxu0 %v1425_v1 }
  0x2a   : > { %1228 = vmatprep.subr.mxu1 %v1425_v1 }
  0x2b   : > { %1210 = vmatmul.mubr.msk.f32.vlgmr.msra.gmra.mrb[2].mxu0 %vm321_vm1, %v299_v32 }
  0x2c   : > { %1221 = vmatmul.mubr.msk.f32.vlgmr.msra.gmra.mrb[2].mxu1 %vm321_vm1, %v300_v33  ;;  %1225 = vmatprep.mubr.msk.f32.mxu0 %vm1424_vm0, %v1425_v1 }
  0x2d   : > { %1230 = vmatprep.mubr.msk.f32.mxu1 %vm1424_vm0, %v1425_v1  ;;  %1224 = vmatpush3.msra.mxu0 %v317_v46 }
  0x2e   : > { %1233 = vmatprep.subr.mxu0 %v1425_v1  ;;  %1229 = vmatpush3.msra.mxu1 %v318_v47 }
  0x2f   : > { %1238 = vmatprep.subr.mxu1 %v1425_v1 }
  0xf6   : > { %v391_v34 = vpop.f32.mrb[0].mxu0 }
  0xf7   : > { %v1189_v35 = vpop.f32.mrb[1].mxu0  ;;  %v615_v36 = vsel %vm614_vm2, %v391_v34, -inf  ;;  %v464_v37 = vpop.f32.mrb[0].mxu1 }
  0xf8   : > { %616 = vmax.xlane.f32.xlu0 %v615_v36  ;;  %v1200_v38 = vpop.f32.mrb[1].mxu1  ;;  %v618_v39 = vsel %vm614_vm2, %v464_v37, -inf }
  0xfc   : > { %619 = vmax.xlane.f32.xlu0 %v618_v39 }
  0xfe   : > { %v537_v40 = vpop.f32.mrb[2].mxu0 }
  0xff   : > { %v1211_v41 = vpop.f32.mrb[3].mxu0  ;;  %v621_v42 = vsel %vm614_vm2, %v537_v40, -inf  ;;  %v610_v43 = vpop.f32.mrb[2].mxu1 }
 0x100   : > { %622 = vmax.xlane.f32.xlu1 %v621_v42  ;;  %v1222_v44 = vpop.f32.mrb[3].mxu1  ;;  %v624_v45 = vsel %vm614_vm2, %v610_v43, -inf }
 0x104   : > { %625 = vmax.xlane.f32.xlu1 %v624_v45 }
 0x185   : > { %v617_v48 = vpop.xlane.xlu0 %616 }
 0x186   : > { %v627_v49 = vsub.f32 %v391_v34, %v617_v48 }
 0x188   : > { %v631_v50 = vmul.f32 1.442695, %v627_v49 }
 0x189   : > { %v620_v51 = vpop.xlane.xlu0 %619 }
 0x18a   : > { %1327 = vpow2.f32 %v631_v50  ;;  %v628_v52 = vsub.f32 %v464_v37, %v620_v51 }
 0x18c   : > { %v633_v53 = vmul.f32 1.442695, %v628_v52 }
 0x18d   : > { %v623_v54 = vpop.xlane.xlu1 %622 }
 0x18e   : > { %1329 = vpow2.f32 %v633_v53  ;;  %v629_v55 = vsub.f32 %v537_v40, %v623_v54 }
 0x190   : > { %v635_v56 = vmul.f32 1.442695, %v629_v55 }
 0x191   : > { %v626_v57 = vpop.xlane.xlu1 %625 }
 0x192   : > { %1331 = vpow2.f32 %v635_v56  ;;  %v630_v58 = vsub.f32 %v610_v43, %v626_v57 }
 0x194   : > { %v1328_v60 = vpop.eup %1327  ;;  %v637_v61 = vmul.f32 1.442695, %v630_v58 }
 0x195   : > { %1226 = vmatmul.mubr.msk.f32.vlgmr.msra.gmra.mrb[4].mxu0 %vm614_vm2, %v1328_v60  ;;  %v639_v62 = vsel %vm614_vm2, %v1328_v60, 0.0 }
 0x196   : > { %1333 = vpow2.f32 %v637_v61  ;;  %640 = vadd.xlane.f32.xlu0 %v639_v62  ;;  %1234 = vmatpush3.msra.mxu0 %v319_v59 }
 0x197   : > { %1235 = vmatprep.mubr.msk.f32.mxu0 %vm1424_vm0, %v1425_v1 }
 0x198   : > { %v1330_v0 = vpop.eup %1329 }
 0x199   : > { %1231 = vmatmul.mubr.msk.f32.vlgmr.msra.gmra.mrb[4].mxu1 %vm614_vm2, %v1330_v0  ;;  %v642_v2 = vsel %vm614_vm2, %v1330_v0, 0.0 }
 0x19a   : > { %643 = vadd.xlane.f32.xlu1 %v642_v2  ;;  %1239 = vmatpush3.msra.mxu1 %v320_v63 }
 0x19b   : > { %1240 = vmatprep.mubr.msk.f32.mxu1 %vm1424_vm0, %v1425_v1 }
 0x19c   : > { %v1332_v3 = vpop.eup %1331 }
 0x19d   : > { %1236 = vmatmul.mubr.msk.f32.vlgmr.msra.gmra.mrb[6].mxu0 %vm614_vm2, %v1332_v3  ;;  %v645_v4 = vsel %vm614_vm2, %v1332_v3, 0.0 }
 0x19e   : > { %646 = vadd.xlane.f32.xlu0 %v645_v4 }
 0x1a0   : > { %v1334_v5 = vpop.eup %1333 }
 0x1a1   : > { %1241 = vmatmul.mubr.msk.f32.vlgmr.msra.gmra.mrb[6].mxu1 %vm614_vm2, %v1334_v5  ;;  %v648_v6 = vsel %vm614_vm2, %v1334_v5, 0.0 }
 0x1a2   : > { %649 = vadd.xlane.f32.xlu1 %v648_v6 }
 0x223   : > { %v641_v7 = vpop.xlane.xlu0 %640 }
 0x224   : > { %1335 = vrcp.f32 %v641_v7 }
 0x227   : > { %v644_v8 = vpop.xlane.xlu1 %643 }
 0x228   : > { %1337 = vrcp.f32 %v644_v8 }
 0x22b   : > { %v647_v9 = vpop.xlane.xlu0 %646 }
 0x22c   : > { %1339 = vrcp.f32 %v647_v9 }
 0x22e   : > { %v1336_v1 = vpop.eup %1335 }
 0x22f   : > { %v955_v10 = vmul.f32 %v1336_v1, %v1328_v60  ;;  %v650_v11 = vpop.xlane.xlu1 %649 }
 0x230   : > { %1341 = vrcp.f32 %v650_v11 }
 0x231   : > { %959 = vst.msk [vmem:[%s291_s24] sm:$0xff] %vm614_vm2, %v955_v10 }
 0x232   : > { %v1338_v12 = vpop.eup %1337 }
 0x233   : > { %v956_v13 = vmul.f32 %v1338_v12, %v1330_v0 }
 0x235   : > { %960 = vst.msk [vmem:[%s291_s24 + $0x8] sm:$0xff] %vm614_vm2, %v956_v13 }
 0x236   : > { %v1340_v14 = vpop.eup %1339 }
 0x237   : > { %v957_v15 = vmul.f32 %v1340_v14, %v1332_v3 }
 0x239   : > { %961 = vst.msk [vmem:[%s291_s24 + $0x10] sm:$0xff] %vm614_vm2, %v957_v15 }
 0x23a   : > { %v1342_v16 = vpop.eup %1341 }
 0x23b   : > { %v958_v17 = vmul.f32 %v1342_v16, %v1334_v5 }
 0x23d   : > { %962 = vst.msk [vmem:[%s291_s24 + $0x18] sm:$0xff] %vm614_vm2, %v958_v17 }
 0x268   : > { %v724_v18 = vpop.f32.mrb[4].mxu0 }
 0x269   : > { %v947_v19 = vmul.f32 %v1336_v1, %v724_v18  ;;  %v1227_v20 = vpop.f32.mrb[5].mxu0 }
 0x26b   : > { %951 = vst.msk [vmem:[%s250_s30] sm:$0xff] %vm321_vm1, %v947_v19 }
 0x26c   : > { %v797_v21 = vpop.f32.mrb[4].mxu1 }
 0x26d   : > { %v948_v22 = vmul.f32 %v1338_v12, %v797_v21  ;;  %v1232_v23 = vpop.f32.mrb[5].mxu1 }
 0x26f   : > { %952 = vst.msk [vmem:[%s250_s30 + $0x8] sm:$0xff] %vm321_vm1, %v948_v22 }
 0x270   : > { %v870_v24 = vpop.f32.mrb[6].mxu0 }
 0x271   : > { %v949_v25 = vmul.f32 %v1340_v14, %v870_v24  ;;  %v1237_v26 = vpop.f32.mrb[7].mxu0 }
 0x273   : > { %953 = vst.msk [vmem:[%s250_s30 + $0x10] sm:$0xff] %vm321_vm1, %v949_v25 }
 0x274   : > { %v943_v27 = vpop.f32.mrb[6].mxu1 }
 0x275   : > { %v950_v28 = vmul.f32 %v1342_v16, %v943_v27  ;;  %v1242_v29 = vpop.f32.mrb[7].mxu1 }
 0x277   : > { %954 = vst.msk [vmem:[%s250_s30 + $0x18] sm:$0xff] %vm321_vm1, %v950_v28 }
 0x278   : > { %1356 = shalt.err (!%p1353_p5)
}
 0x279   : > { %s1357_s14 = scalar_lea.hbm %s1601_s9, 512  ;;  %s1361_s24 = scalar_lea.hbm %s1653_s3, 2048 }
 0x27a   : > { %p1358_p6 = scmp.ne.s32.totalorder %s1601_s9, %s1357_s14  ;;  %p1362_p10 = scmp.lt.u32.totalorder %s1601_s9, %s1653_s3 }
 0x27b   : > { %p1363_p11 = scmp.lt.u32.totalorder %s1361_s24, %s1357_s14  ;;  %p1365_p13 = scmp.lt.u32.totalorder %s1357_s14, %s1601_s9 }
 0x27c   : > { %p1359_p7 = pnand %p1358_p6, %p1494_p4 }
 0x27d   : > { %p1364_p12 = por %p1363_p11, %p1362_p10 }
 0x27e   : > { %p1360_p9 = pneg %p1359_p7 }
 0x27f   : > { %p1366_p0 = por %p1365_p13, %p1364_p12 }
 0x281   : > { %p1367_p1 = pnand %p1366_p0, %p1360_p9 }
 0x283   : > { %1370 = shalt.err (!%p1367_p1)
}
 0x284   : > { %s1427_s30 = smov 128   ;;  %s1428_s6 = smov 8  }
 0x285   : > { %1267 = dma.vmem_to_hbm [thread:$0]  (%p1494_p4), %s1596_s5, 512, %s1601_s9, %s1604_s10, %s1427_s30, %s1427_s30, %s1428_s6  }
 0x286 PF: > { %p1273_p2 = scmp.ge.s32.totalorder %s1421_s20, 2  ;;  %s1005_s7 = sand.u32 1, %s1401_s15  }
 0x287   : > { %s1006_s8 = scalar_lea.sflag [#allocation3], %s1005_s7 }
 0x288   : > { %p1270_p3 = pnand %p1273_p2, %p1501_p8 }
 0x28a   : > { %1396 = dma.done.wait (!%p1270_p3), %s1006_s8, 512  }
 0x28b   : > { %1398 = vsyncadd (!%p1270_p3), %s1006_s8, 4294966784  ;;  %s18_s20 = sadd.s32 1, %s1421_s20   ;;  %s1657_s15 = smov %s1405_s16 }
 0x28c   : > { %p15_p5 = scmp.ge.s32.totalorder %s18_s20, 6   ;;  %s1658_s16 = smov %s1409_s17 }
 0x28d   : > { %s1659_s17 = smov %s1507_s28  ;;  %s1660_s18 = smov %s1417_s19 }
 0x28e   : > { %s1661_s19 = smov %s1663_s23  ;;  %17 = sbr.rel (!%p15_p5) target bundleno = 4 (0x4), region = 85 }
 0x295   :  { %1022 = vsyncpa [#allocation3], 1 }
 0x296   :  { %1024 = vsyncpa [#allocation3 + $0x1], 1 }

</bundles_post_ra>
